<compile_context>
chip_gen: v6e
topology: v6e:2x2x1
jax: 0.10.0
libtpu: 0.0.40
codegen_flags: <defaults>
</compile_context>

<pallas_src>
import math

import jax
import jax.numpy as jnp
from jax import lax
from jax.experimental import pallas as pl
from jax.experimental.pallas import tpu as pltpu

NUM_LEVELS = 4
POOL_SIZES = [2 ** i for i in range(NUM_LEVELS)]   # AdaptiveMaxPool1d output sizes
TOTAL_POOL = sum(POOL_SIZES)                        # 1 + 2 + 4 + 8 = 15


def _adaptive_windows(L, S):
    # PyTorch AdaptiveMaxPool1d window j: [floor(j*L/S), ceil((j+1)*L/S))
    return [(math.floor(j * L / S), math.ceil((j + 1) * L / S)) for j in range(S)]


def _vmem_need(L, D, tm):
    # double-buffered key / query / out blocks + the live (tm, L) feats slab
    # + small pooling temporaries.  All f32.
    return 4 * (2 * L * D + 2 * tm * D + 2 * TOTAL_POOL * tm + tm * L + tm * 32)


def _pick_tm(L, D, budget_bytes):
    """Largest row tile (multiple of 128, dividing L) that fits the VMEM budget."""
    for tm in (512, 256, 128):
        if L % tm == 0 and _vmem_need(L, D, tm) <= budget_bytes:
            return tm
    for tm in (128, 256, 512):          # divides L but over budget: smallest first
        if L % tm == 0:
            return tm
    return L                            # ragged L: one tile per batch element


def _pool_rows(feats, L):
    """Adaptive max-pool (output sizes 1,2,4,8) over the last axis of (tm, L)."""
    if L % 8 == 0 and L >= 8:
        w = L // 8
        # Level 8: eight contiguous lane-slice reductions (no relayout of the
        # big feats slab, no reshape).
        cols8 = [jnp.max(feats[:, k * w:(k + 1) * w], axis=-1, keepdims=True)
                 for k in range(8)]                                    # 8 x (tm, 1)
        # Coarser levels nest exactly -> pairwise maxima on the tiny columns.
        cols4 = [jnp.maximum(cols8[2 * k], cols8[2 * k + 1]) for k in range(4)]
        cols2 = [jnp.maximum(cols4[2 * k], cols4[2 * k + 1]) for k in range(2)]
        col1 = jnp.maximum(cols2[0], cols2[1])
        # Exactly one concatenate; PyTorch cat order: level 1, 2, 4, 8.
        return jnp.concatenate([col1] + cols2 + cols4 + cols8, axis=-1)  # (tm, 15)
    # Ragged L: exact per-window fallback matching PyTorch adaptive windows.
    cols = []
    for S in POOL_SIZES:
        for (s, e) in _adaptive_windows(L, S):
            cols.append(jnp.max(feats[:, s:e], axis=-1, keepdims=True))
    return jnp.concatenate(cols, axis=-1)


def spp_kernel(q_ref, k_ref, o_ref):
    # q_ref: (1, TM, D) scaled-query row tile
    # k_ref: (1, L, D)  key for the current batch element (fetched once per b)
    # o_ref: (1, 15, TM) pooled output tile, TM on the lane axis (lane-dense)
    L = k_ref.shape[1]

    # (TM, L) slab of the attention map; contraction is last-last so no key
    # transpose is materialized (plain MXU matmul).
    feats = lax.dot_general(
        q_ref[0], k_ref[0],
        dimension_numbers=(((1,), (1,)), ((), ())),
        preferred_element_type=jnp.float32)

    pooled = _pool_rows(feats, L)          # (TM, 15)
    # tanh AFTER the max-pool: bit-exact (tanh strictly increasing) and only
    # TM*15 transcendentals per tile instead of TM*L.
    o_ref[0] = jnp.tanh(pooled).T          # (15, TM) lane-dense store


def inter_sentence_spp3(x, wK, bK, wQ, bQ, *, tm=None):
    """x: (B, L, D) f32; wK/wQ: (D, D) PyTorch Linear weights (out, in); bK/bQ: (D,)."""
    B, L, D = x.shape
    scale = jnp.float32(1.0 / math.sqrt(D))

    # Fused K/Q projection as one XLA GEMM; 1/sqrt(D) folded into the query
    # half so the kernel never touches the scale.
    w_kq = jnp.concatenate([wK.T, wQ.T * scale], axis=1)            # (D, 2D)
    b_kq = jnp.concatenate([bK, bQ * scale])                        # (2D,)
    kq = jnp.einsum("bld,de->ble", x, w_kq) + b_kq                  # (B, L, 2D)
    key = kq[..., :D]
    query = kq[..., D:]

    try:
        phys_vmem = int(pltpu.get_tpu_info().vmem_capacity_bytes)
    except Exception:
        phys_vmem = 64 * 1024 * 1024      # conservative (v7x per-core VMEM)

    if tm is None:
        tm = _pick_tm(L, D, int(0.75 * phys_vmem))
    assert L % tm == 0, "tm must divide doc_l (no tail-tile handling)"
    assert tm == L or tm % 128 == 0, "tm must be a multiple of 128 or equal doc_l"
    T = L // tm

    need = _vmem_need(L, D, tm)
    vmem_limit = int(min(max(32 * 2 ** 20, int(1.5 * need) + (2 << 20)),
                         int(0.85 * phys_vmem)))

    out_t = pl.pallas_call(
        spp_kernel,
        out_shape=jax.ShapeDtypeStruct((B, TOTAL_POOL, L), jnp.float32),
        grid=(B, T),
        in_specs=[
            pl.BlockSpec((1, tm, D), lambda b, j: (b, j, 0)),   # query row tile
            pl.BlockSpec((1, L, D), lambda b, j: (b, 0, 0)),    # key, per batch
        ],
        out_specs=pl.BlockSpec((1, TOTAL_POOL, tm), lambda b, j: (b, 0, j)),
        compiler_params=pltpu.CompilerParams(
            # No scratch / cross-step dependency -> both axes parallel
            # (megacore on v7x; harmless elsewhere).
            dimension_semantics=("parallel", "parallel"),
            vmem_limit_bytes=vmem_limit),
        cost_estimate=pl.CostEstimate(
            flops=2 * B * L * L * D,
            transcendentals=B * L * TOTAL_POOL,
            bytes_accessed=4 * (2 * B * L * D + B * TOTAL_POOL * L)),
    )(query, key)

    return jnp.transpose(out_t, (0, 2, 1))                          # (B, L, 15)


def _reference(x, wK, bK, wQ, bQ):
    B, L, D = x.shape
    key = x @ wK.T + bK
    query = x @ wQ.T + bQ
    feats = jnp.tanh(jnp.einsum("bld,bmd->blm", query, key) / math.sqrt(D))
    cols = []
    for S in POOL_SIZES:
        for (s, e) in _adaptive_windows(L, S):
            cols.append(jnp.max(feats[..., s:e], axis=-1, keepdims=True))
    return jnp.concatenate(cols, axis=-1)


if __name__ == "__main__":
    B, L, D = 2, 8, 32                      # batch, doc_l, hidden_dim

    root = jax.random.PRNGKey(0)
    kx, k1, k2, k3, k4 = jax.random.split(root, 5)

    x = jax.random.normal(kx, (B, L, D), jnp.float32)
    bound = 1.0 / math.sqrt(D)              # deterministic Linear-style init
    wK = jax.random.uniform(k1, (D, D), jnp.float32, -bound, bound)
    bK = jax.random.uniform(k2, (D,), jnp.float32, -bound, bound)
    wQ = jax.random.uniform(k3, (D, D), jnp.float32, -bound, bound)
    bQ = jax.random.uniform(k4, (D,), jnp.float32, -bound, bound)

    out = inter_sentence_spp3(x, wK, bK, wQ, bQ)
    out = jax.block_until_ready(out)

    ref = _reference(x, wK, bK, wQ, bQ)
    assert out.shape == (B, L, TOTAL_POOL), out.shape
    assert jnp.allclose(out, ref, atol=2e-5, rtol=2e-5), "mismatch vs reference"

    print("KERNEL_OK")
</pallas_src>

<mosaic_0001>
module attributes {stable_mosaic.version = 11 : i64} {
  func.func @spp_kernel(%arg0: i32, %arg1: i32, %arg2: memref<1x8x32xf32, #tpu.memory_space<vmem>>, %arg3: memref<1x8x32xf32, #tpu.memory_space<vmem>>, %arg4: memref<1x15x8xf32, #tpu.memory_space<vmem>>) attributes {dimension_semantics = [#tpu.dimension_semantics<parallel>, #tpu.dimension_semantics<parallel>], iteration_bounds = array<i64: 2, 1>, scalar_prefetch = 0 : i64, scratch_operands = 0 : i64, tpu.core_type = #tpu.core_type<tc>, window_params = [{transform_indices = @transform_0, window_bounds = array<i64: 1, 8, 32>}, {transform_indices = @transform_1, window_bounds = array<i64: 1, 8, 32>}, {transform_indices = @transform_2, window_bounds = array<i64: 1, 15, 8>}]} {
    %c0 = arith.constant 0 : index
    %c0_0 = arith.constant 0 : index
    %c0_1 = arith.constant 0 : index
    %0 = vector.load %arg2[%c0, %c0_0, %c0_1] : memref<1x8x32xf32, #tpu.memory_space<vmem>>, vector<1x8x32xf32>
    %1 = vector.shape_cast %0 : vector<1x8x32xf32> to vector<8x32xf32>
    %c0_2 = arith.constant 0 : index
    %c0_3 = arith.constant 0 : index
    %c0_4 = arith.constant 0 : index
    %2 = vector.load %arg3[%c0_2, %c0_3, %c0_4] : memref<1x8x32xf32, #tpu.memory_space<vmem>>, vector<1x8x32xf32>
    %3 = vector.shape_cast %2 : vector<1x8x32xf32> to vector<8x32xf32>
    %cst = arith.constant dense<0.000000e+00> : vector<8x8xf32>
    %4 = tpu.matmul %1, %3, %cst {dimension_numbers = #tpu.dot_dimension_numbers<[1], [1], [0], [0], [0, 0, 1, 0], [], []>} : vector<8x32xf32>, vector<8x32xf32>, vector<8x8xf32> -> vector<8x8xf32>
    %5 = vector.extract_strided_slice %4 {offsets = [0, 0], sizes = [8, 1], strides = [1, 1]} : vector<8x8xf32> to vector<8x1xf32>
    %cst_5 = arith.constant dense<0xFF800000> : vector<8xf32>
    %6 = vector.multi_reduction <maximumf>, %5, %cst_5 [1] : vector<8x1xf32> to vector<8xf32>
    %7 = vector.shape_cast %6 : vector<8xf32> to vector<8x1xf32>
    %8 = vector.extract_strided_slice %4 {offsets = [0, 1], sizes = [8, 1], strides = [1, 1]} : vector<8x8xf32> to vector<8x1xf32>
    %cst_6 = arith.constant dense<0xFF800000> : vector<8xf32>
    %9 = vector.multi_reduction <maximumf>, %8, %cst_6 [1] : vector<8x1xf32> to vector<8xf32>
    %10 = vector.shape_cast %9 : vector<8xf32> to vector<8x1xf32>
    %11 = vector.extract_strided_slice %4 {offsets = [0, 2], sizes = [8, 1], strides = [1, 1]} : vector<8x8xf32> to vector<8x1xf32>
    %cst_7 = arith.constant dense<0xFF800000> : vector<8xf32>
    %12 = vector.multi_reduction <maximumf>, %11, %cst_7 [1] : vector<8x1xf32> to vector<8xf32>
    %13 = vector.shape_cast %12 : vector<8xf32> to vector<8x1xf32>
    %14 = vector.extract_strided_slice %4 {offsets = [0, 3], sizes = [8, 1], strides = [1, 1]} : vector<8x8xf32> to vector<8x1xf32>
    %cst_8 = arith.constant dense<0xFF800000> : vector<8xf32>
    %15 = vector.multi_reduction <maximumf>, %14, %cst_8 [1] : vector<8x1xf32> to vector<8xf32>
    %16 = vector.shape_cast %15 : vector<8xf32> to vector<8x1xf32>
    %17 = vector.extract_strided_slice %4 {offsets = [0, 4], sizes = [8, 1], strides = [1, 1]} : vector<8x8xf32> to vector<8x1xf32>
    %cst_9 = arith.constant dense<0xFF800000> : vector<8xf32>
    %18 = vector.multi_reduction <maximumf>, %17, %cst_9 [1] : vector<8x1xf32> to vector<8xf32>
    %19 = vector.shape_cast %18 : vector<8xf32> to vector<8x1xf32>
    %20 = vector.extract_strided_slice %4 {offsets = [0, 5], sizes = [8, 1], strides = [1, 1]} : vector<8x8xf32> to vector<8x1xf32>
    %cst_10 = arith.constant dense<0xFF800000> : vector<8xf32>
    %21 = vector.multi_reduction <maximumf>, %20, %cst_10 [1] : vector<8x1xf32> to vector<8xf32>
    %22 = vector.shape_cast %21 : vector<8xf32> to vector<8x1xf32>
    %23 = vector.extract_strided_slice %4 {offsets = [0, 6], sizes = [8, 1], strides = [1, 1]} : vector<8x8xf32> to vector<8x1xf32>
    %cst_11 = arith.constant dense<0xFF800000> : vector<8xf32>
    %24 = vector.multi_reduction <maximumf>, %23, %cst_11 [1] : vector<8x1xf32> to vector<8xf32>
    %25 = vector.shape_cast %24 : vector<8xf32> to vector<8x1xf32>
    %26 = vector.extract_strided_slice %4 {offsets = [0, 7], sizes = [8, 1], strides = [1, 1]} : vector<8x8xf32> to vector<8x1xf32>
    %cst_12 = arith.constant dense<0xFF800000> : vector<8xf32>
    %27 = vector.multi_reduction <maximumf>, %26, %cst_12 [1] : vector<8x1xf32> to vector<8xf32>
    %28 = vector.shape_cast %27 : vector<8xf32> to vector<8x1xf32>
    %29 = arith.maximumf %7, %10 : vector<8x1xf32>
    %30 = arith.maximumf %13, %16 : vector<8x1xf32>
    %31 = arith.maximumf %19, %22 : vector<8x1xf32>
    %32 = arith.maximumf %25, %28 : vector<8x1xf32>
    %33 = arith.maximumf %29, %30 : vector<8x1xf32>
    %34 = arith.maximumf %31, %32 : vector<8x1xf32>
    %35 = arith.maximumf %33, %34 : vector<8x1xf32>
    %36 = tpu.concatenate %35, %33, %34, %29, %30, %31, %32, %7, %10, %13, %16, %19, %22, %25, %28 in 1 : vector<8x1xf32>, vector<8x1xf32>, vector<8x1xf32>, vector<8x1xf32>, vector<8x1xf32>, vector<8x1xf32>, vector<8x1xf32>, vector<8x1xf32>, vector<8x1xf32>, vector<8x1xf32>, vector<8x1xf32>, vector<8x1xf32>, vector<8x1xf32>, vector<8x1xf32>, vector<8x1xf32> -> vector<8x15xf32>
    %37 = math.tanh %36 : vector<8x15xf32>
    %38 = tpu.transpose %37, [1, 0] : vector<8x15xf32> -> vector<15x8xf32>
    %c0_13 = arith.constant 0 : index
    %c0_14 = arith.constant 0 : index
    %c0_15 = arith.constant 0 : index
    %39 = vector.load %arg4[%c0_13, %c0_14, %c0_15] : memref<1x15x8xf32, #tpu.memory_space<vmem>>, vector<1x15x8xf32>
    %40 = vector.shape_cast %39 : vector<1x15x8xf32> to vector<15x8xf32>
    %41 = vector.shape_cast %38 : vector<15x8xf32> to vector<1x15x8xf32>
    tpu.vector_store %arg4[%c0_13, %c0_14, %c0_15], %41 {strides = array<i32>} : memref<1x15x8xf32, #tpu.memory_space<vmem>>, vector<1x15x8xf32>,
    return
  }
  func.func @transform_0(%arg0: i32, %arg1: i32) -> (i32, i32, i32) {
    %c0_i32 = arith.constant 0 : i32
    %c0_i32_0 = arith.constant 0 : i32
    return %arg0, %arg1, %c0_i32 : i32, i32, i32
  }
  func.func @transform_1(%arg0: i32, %arg1: i32) -> (i32, i32, i32) {
    %c0_i32 = arith.constant 0 : i32
    %c0_i32_0 = arith.constant 0 : i32
    %c0_i32_1 = arith.constant 0 : i32
    return %arg0, %c0_i32, %c0_i32_0 : i32, i32, i32
  }
  func.func @transform_2(%arg0: i32, %arg1: i32) -> (i32, i32, i32) {
    %c0_i32 = arith.constant 0 : i32
    %c0_i32_0 = arith.constant 0 : i32
    return %arg0, %c0_i32, %arg1 : i32, i32, i32
  }
}

</mosaic_0001>

<bundles_post_ra>
// kernel: tpu_custom_call.1
= control target key start
LH: loop header
LB: loop body
LE: loop exit
PB: predicated region body
PF: predicated region fallthrough
CT: control target
= control target key end

     0   :  { %7 = vsyncpa [#allocation3], 0  ;;  %s872_s0 = inlined_call_operand.hbm [shape: f32[2,8,32], index: 0, kind: input, shape index: {}]   ;;  %s873_s1 = inlined_call_operand.hbm [shape: f32[2,8,32], index: 1, kind: input, shape index: {}]   ;;  %s874_s2 = inlined_call_operand.vmem [shape: f32[2,15,8], index: 2, kind: output, shape index: {}]  }
   0x1   :  { %9 = vsyncpa [#allocation3 + $0x1], 0 }
   0x2   :  { %10 = vsyncpa [#allocation5], 0 }
   0x3   :  { %12 = vsyncpa [#allocation5 + $0x1], 0  ;;  %s744_s9 = smov 0   ;;  %s746_s10 = smov 0  }
   0x4   :  { %s748_s11 = smov 0   ;;  %s750_s12 = smov 0  }
   0x5   :  { %s752_s13 = smov 0   ;;  %s754_s14 = smov 0  }
   0x6 LB: > { %s510_s15 = sadd.s32 4294967295, %s716_s14   ;;  %s30_s16 = sadd.s32 1, %s712_s13  ;;  %s716_s14 = sphi %s754_s14, %s18_s14   ;;  %s712_s13 = sphi %s752_s13, %s883_s13   ;;  %s708_s12 = sphi %s750_s12, %s882_s12   ;;  %s704_s11 = sphi %s748_s11, %s881_s11   ;;  %s700_s10 = sphi %s746_s10, %s880_s10   ;;  %s696_s9 = sphi %s744_s9, %s879_s9  }
   0x7   : > { %p32_p0 = scmp.ge.s32.totalorder %s30_s16, 2  ;;  %s39_s17 = sadd.s32 1, %s704_s11 }
   0x8   : > { %p46_p1 = scmp.ne.s32.totalorder %s704_s11, %s700_s10  ;;  %p47_p2 = scmp.eq.s32.totalorder %s716_s14, 0 }
   0x9   : > { %s885_s16 = smov (%p32_p0, %s30_s16), 0  ;;  %p52_p4 = scmp.ne.s32.totalorder %s700_s10, %s696_s9 }
   0xa   : > { %p780_p3 = por %p47_p2, %p46_p1  ;;  %s34_s19 = ssub.s32 %s712_s13, %s885_s16 }
   0xb   : > { %p53_p5 = scmp.eq.s32.totalorder %s510_s15, 0  ;;  %p37_p6 = scmp.eq.s32.totalorder %s34_s19, 0 }
   0xc   : > { %p546_p8 = scmp.lt.s32.totalorder %s716_s14, 2  ;;  %s796_s22 = sand.u32 1, %s704_s11  }
   0xd   : > { %p787_p7 = por %p53_p5, %p52_p4  ;;  %s515_s23 = sshll.u32 %s712_s13, 7 }
   0xe   : > { %s793_s21 = scalar_select %p37_p6, %s704_s11, %s39_s17  }
   0xf   : > { %s514_s24 = sshll.u32 %s796_s22, 3  ;;  %s140_s27 = scalar_lea.hbm %s872_s0, %s515_s23 }
  0x10   : > { %s134_s28 = scalar_lea.vmem [#allocation2], %s514_s24  ;;  %p805_p9 = pnand %p546_p8, %p780_p3 }
  0x11   : > { %s142_s29 = sshll.u32 %s134_s28, 4  ;;  %p518_p10 = scmp.ge.s32.totalorder %s716_s14, 1  ;;  %s143_s29 = int_to_ptr.vmem [resolvable:$true] %s142_s29 }
  0x12   : > { %p165_p11 = scmp.lt.s32.totalorder %s716_s14, 3  ;;  %s131_s3 = scalar_lea.sflag [#allocation3], %s796_s22 }
  0x13   : > { %p608_p12 = pneg %p805_p9  ;;  %s619_s4 = scalar_lea.vmem %s143_s29, 128 }
  0x14   : > { %p620_p13 = scmp.ne.s32.totalorder %s143_s29, %s619_s4  ;;  %s718_s5 = smov [#allocation2]  }
  0x15   : > { %s624_s6 = sshll.u32 %s718_s5, 4  ;;  %s625_s6 = int_to_ptr.vmem [resolvable:$false] %s624_s6 }
  0x16   : > { %p622_p0 = pnand %p620_p13, %p608_p12  ;;  %s626_s7 = scalar_lea.vmem %s625_s6, 256 }
  0x17   : > { %p627_p2 = scmp.lt.s32.totalorder %s143_s29, %s625_s6  ;;  %p628_p3 = scmp.lt.s32.totalorder %s626_s7, %s619_s4 }
  0x18   : > { %p623_p1 = pneg %p622_p0 }
  0x19   : > { %p629_p4 = por %p628_p3, %p627_p2 }
  0x1b   : > { %p630_p5 = pnand %p629_p4, %p623_p1 }
  0x1d   : > { %633 = shalt.err (!%p630_p5)
}
  0x1e   : > { %542 = dma.hbm_to_vmem [thread:$0]  (!%p805_p9), %s140_s27, 128, %s143_s29, %s131_s3  }
  0x1f   : > { %p823_p6 = pnand %p518_p10, %p165_p11  ;;  %s158_s17 = scalar_lea.hbm %s873_s1, %s515_s23 }
  0x20   : > { %s153_s18 = scalar_lea.vmem [#allocation4], %s514_s24  ;;  %s150_s25 = scalar_lea.sflag [#allocation5], %s796_s22 }
  0x21   : > { %s160_s19 = sshll.u32 %s153_s18, 4  ;;  %s719_s27 = smov [#allocation4]   ;;  %s161_s19 = int_to_ptr.vmem [resolvable:$true] %s160_s19 }
  0x22   : > { %s647_s26 = scalar_lea.vmem %s161_s19, 128  ;;  %s652_s28 = sshll.u32 %s719_s27, 4  ;;  %s653_s28 = int_to_ptr.vmem [resolvable:$false] %s652_s28 }
  0x23   : > { %p648_p8 = scmp.ne.s32.totalorder %s161_s19, %s647_s26  ;;  %s654_s29 = scalar_lea.vmem %s653_s28, 256 }
  0x24   : > { %p655_p10 = scmp.lt.s32.totalorder %s161_s19, %s653_s28  ;;  %p656_p11 = scmp.lt.s32.totalorder %s654_s29, %s647_s26 }
  0x25   : > { %p650_p13 = pnand %p648_p8, %p608_p12 }
  0x26   : > { %p657_p1 = por %p656_p11, %p655_p10 }
  0x27   : > { %p651_p0 = pneg %p650_p13 }
  0x29   : > { %p658_p2 = pnand %p657_p1, %p651_p0 }
  0x2b   : > { %661 = shalt.err (!%p658_p2)
}
  0x2c   : > { %545 = dma.hbm_to_vmem [thread:$0]  (!%p805_p9), %s158_s17, 128, %s161_s19, %s150_s25  }
  0x2d   : > { %169 = sbr.rel (%p823_p6) target bundleno = 762 (0x2fa), region = 28  ;;  %s171_s22 = sand.u32 (!%p823_p6), 1, %s700_s10  }
  0x2e   : > { %s519_s23 = sshll.u32 (!%p823_p6), %s171_s22, 3  ;;  %s172_s24 = scalar_lea.sflag (!%p823_p6), [#allocation3], %s171_s22 }
  0x2f   : > { %s175_s3 = scalar_lea.vmem (!%p823_p6), [#allocation2], %s519_s23 }
  0x32   : > { %687 = dma.done.wait (%p787_p7), %s172_s24, 128  }
  0x33   : > { %689 = vsyncadd (%p787_p7), %s172_s24, 4294967168  ;;  %s181_s4 = scalar_lea.sflag [#allocation5], %s171_s22  ;;  %s184_s5 = scalar_lea.vmem [#allocation4], %s519_s23 }
  0x34   : > { %691 = dma.done.wait (%p787_p7), %s181_s4, 128  }
  0x35   : > { %693 = vsyncadd (%p787_p7), %s181_s4, 4294967168  ;;  %v720_v0 = vmov 0.0   ;;  %vm721_vm0 = vmmov 0   ;;  %vm223_vm1 = vcmask 261120   ;;  %v222_v1 = vld [vmem:[%s184_s5] sm:$0xff]  ;;  %v221_v2 = vld [vmem:[%s175_s3] sm:$0xff] }
  0x36   : > { %530 = vmatprep.subr.mxu0 %v720_v0  ;;  %532 = vmatprep.mubr.msk.f32.mxu0 %vm721_vm0, %v720_v0  ;;  %s722_s30 = smov 127   ;;  %s723_s6 = smov 3   ;;  %vm333_vm2 = vcmask 7168   ;;  %vm335_vm3 = vcmask 15360   ;;  %vm337_vm4 = vcmask 23552   ;;  %vm339_vm5 = vcmask 31744  }
  0x37   : > { %531 = vmatpush3.xpose.msk.msra.mxu0 %vm223_vm1, %v222_v1  ;;  %s724_s7 = smov 126   ;;  %s725_s20 = smov 124   ;;  %vm341_vm6 = vcmask 39936   ;;  %vm343_vm7 = vcmask 48128   ;;  %vm345_vm8 = vcmask 56320   ;;  %vm347_vm9 = vcmask 64512  }
  0x38   : > { %s726_s8 = smov 2   ;;  %s727_s9 = smov 1   ;;  %vm349_vm10 = vcmask 72704   ;;  %vm351_vm11 = vcmask 80896   ;;  %vm353_vm12 = vcmask 89088   ;;  %vm355_vm13 = vcmask 97280  }
  0x39   : > { %s728_s15 = smov 7   ;;  %vm357_vm14 = vcmask 105472   ;;  %vm359_vm15 = vcmask 113664   ;;  %p213_p7 = scmp.lt.s32.totalorder %s708_s12, 1  ;;  %vm395_vm0 = vcmask 63488  }
  0x3a   : > { %533 = vmatmul.mubr.msk.f32.vlgmr.msra.gmra.mxu0 %vm223_vm1, %v221_v2 }
  0x3b   : > { %s887_s12 = smov (!%p213_p7, %s708_s12), 1 }
  0x3c   : > { %s527_s17 = sshll.u32 %s887_s12, 4 }
  0x3d   : > { %s220_s25 = scalar_lea.vmem %s874_s2, %s527_s17 }
  0xfa   : > { %v296_v3 = vpop.f32.mrf.mxu0 }
  0xfb   : > { %301 = vrot.lane.b32.xlu0 %v296_v3, %s722_s30 }
  0xfc   : > { %v534_v4 = vpop.f32.mrf.mxu0 }
 0x16d   : > { %v302_v5 = vpop.permute.xlu0 %301 }
 0x16e   : > { %v304_v6 = vmax.f32 %v296_v3, %v302_v5 }
 0x170   : > { %321 = vrot.lane.b32.xlu1 %v304_v6, %s723_s6  ;;  %306 = vrot.lane.b32.xlu0 %v304_v6, %s724_s7 }
 0x1e2   : > { %v307_v7 = vpop.permute.xlu0 %306  ;;  %v322_v9 = vpop.permute.xlu1 %321 }
 0x1e3   : > { %v309_v8 = vmax.f32 %v304_v6, %v307_v7 }
 0x1e5   : > { %318 = vrot.lane.b32.xlu0 %v309_v8, %s724_s7  ;;  %311 = vrot.lane.b32.xlu1 %v309_v8, %s725_s20 }
 0x1e9   : > { %324 = vrot.lane.b32.xlu0 %v304_v6, %s726_s8  ;;  %315 = vrot.lane.b32.xlu1 %v309_v8, %s727_s9 }
 0x1ed   : > { %330 = vrot.lane.b32.xlu0 %v296_v3, %s728_s15  ;;  %327 = vrot.lane.b32.xlu1 %v304_v6, %s727_s9 }
 0x257   : > { %v319_v10 = vpop.permute.xlu0 %318  ;;  %v312_v11 = vpop.permute.xlu1 %311 }
 0x258   : > { %v314_v12 = vmax.f32 %v309_v8, %v312_v11 }
 0x25b   : > { %v325_v13 = vpop.permute.xlu0 %324  ;;  %v316_v14 = vpop.permute.xlu1 %315 }
 0x25c   : > { %v334_v15 = vsel %vm333_vm2, %v314_v12, %v316_v14 }
 0x25d   : > { %v336_v16 = vsel %vm335_vm3, %v334_v15, %v319_v10 }
 0x25e   : > { %v338_v17 = vsel %vm337_vm4, %v336_v16, %v322_v9 }
 0x25f   : > { %v340_v18 = vsel %vm339_vm5, %v338_v17, %v325_v13  ;;  %v328_v19 = vpop.permute.xlu1 %327  ;;  %v331_v21 = vpop.permute.xlu0 %330 }
 0x260   : > { %v342_v20 = vsel %vm341_vm6, %v340_v18, %v328_v19 }
 0x261   : > { %v344_v22 = vsel %vm343_vm7, %v342_v20, %v304_v6 }
 0x262   : > { %v346_v23 = vsel %vm345_vm8, %v344_v22, %v331_v21 }
 0x263   : > { %v348_v24 = vsel %vm347_vm9, %v346_v23, %v331_v21 }
 0x264   : > { %v350_v25 = vsel %vm349_vm10, %v348_v24, %v331_v21 }
 0x265   : > { %v352_v26 = vsel %vm351_vm11, %v350_v25, %v331_v21 }
 0x266   : > { %v354_v27 = vsel %vm353_vm12, %v352_v26, %v331_v21 }
 0x267   : > { %v356_v28 = vsel %vm355_vm13, %v354_v27, %v331_v21 }
 0x268   : > { %v358_v29 = vsel %vm357_vm14, %v356_v28, %v331_v21 }
 0x269   : > { %v360_v30 = vsel %vm359_vm15, %v358_v29, %v331_v21 }
 0x26a   : > { %604 = vtanh.f32 %v360_v30 }
 0x277   : > { %v605_v31 = vpop.eup %604 }
 0x278   : > { %362 = vxpose.xlu1.b32.start.end [1/1] (short) (narrow) %v605_v31, 16 }
 0x2f4   : > { %v378_v32 = vpop.trf.xlu1 }
 0x2f5   : > { %394 = vst.msk [vmem:[%s220_s25] sm:$0xff] %vm347_vm9, %v378_v32 }
 0x2f8   : > { %v379_v33 = vpop.trf.xlu1 }
 0x2f9   : > { %396 = vst.msk [vmem:[%s220_s25 + $0x8] sm:$0x7f] %vm395_vm0, %v379_v33 }
 0x2fa PF: > { %s18_s14 = sadd.s32 1, %s716_s14   ;;  %s879_s9 = smov %s700_s10 }
 0x2fb   : > { %p15_p9 = scmp.ge.s32.totalorder %s18_s14, 4   ;;  %s880_s10 = smov %s704_s11 }
 0x2fc   : > { %s881_s11 = smov %s793_s21  ;;  %s882_s12 = smov %s712_s13 }
 0x2fd   : > { %s883_s13 = smov %s885_s16  ;;  %17 = sbr.rel (!%p15_p9) target bundleno = 6 (0x6), region = 81 }
 0x302   :  { %424 = vsyncpa [#allocation3], 1 }
 0x303   :  { %426 = vsyncpa [#allocation3 + $0x1], 1 }
 0x304   :  { %427 = vsyncpa [#allocation5], 1 }
 0x305   :  { %429 = vsyncpa [#allocation5 + $0x1], 1 }

</bundles_post_ra>
